<compile_context>
chip_gen: v5e
topology: v5e:2x2
jax: 0.10.0
libtpu: 0.0.40
codegen_flags: <defaults>
</compile_context>

<pallas_src>
import jax
import jax.numpy as jnp
from jax.experimental import pallas as pl
from jax.experimental.pallas import tpu as pltpu


def rnn_kernel(x_ref, wx_ref, wh_ref, wd_ref, b_ref, o_ref):
    # x_ref : (T, 1, tb, in_dim)   one batch tile, time-major
    # wx_ref: (latent, in_dim)     W_lin[:, :in_dim]   (native orientation)
    # wh_ref: (latent, latent)     W_lin[:, in_dim:]   (native orientation)
    # wd_ref: (out_pad, latent)    W_dec zero-padded to 128 output lanes
    # b_ref : (1, out_pad)         b_dec zero-padded (f32)
    # o_ref : (1, tb, out_pad)     lane-dense output block
    T, _, TB, I = x_ref.shape
    L = wh_ref.shape[0]
    f32 = jnp.float32
    nt = (((1,), (1,)), ((), ()))          # contract last axes:  a @ b^T

    wh = wh_ref[...]

    # Hoisted input projection: ONE MXU matmul for every timestep of this
    # batch tile (off the serial chain).  The reshape merges leading dims
    # only; it is free when tb is a multiple of 8, a small one-time relayout
    # otherwise — never on the per-step critical path.
    x2d = x_ref[...].reshape(T * TB, I)
    pre = jax.lax.dot_general(x2d, wx_ref[...], nt,
                              preferred_element_type=f32)
    pre = pre.reshape(T, TB, L)            # pre[t] is a leading-axis slice

    # Strictly serial recurrence: step t+1's h@Wh^T consumes step t's tanh
    # output, so nothing overlaps across steps.  The static unroll only
    # removes loop overhead at small T; long T falls back to fori_loop.
    h = jnp.tanh(pre[0])                   # h_0 == 0  ->  skip h@Wh exactly

    def step(t, h):
        hwh = jax.lax.dot_general(h.astype(wh.dtype), wh, nt,
                                  preferred_element_type=f32)
        return jnp.tanh(pre[t] + hwh)

    if T <= 32:                            # small static T: full unroll
        for t in range(1, T):
            h = step(t, h)
    else:                                  # long T: bounded code size / vregs
        h = jax.lax.fori_loop(1, T, step, h, unroll=4)

    # Decoder: lane-dense (tb, 128) store; padded columns are tanh(0) == 0
    # and are sliced off in the wrapper.
    logits = jax.lax.dot_general(h.astype(wd_ref.dtype), wd_ref[...], nt,
                                 preferred_element_type=f32) + b_ref[...]
    o_ref[0] = jnp.tanh(logits).astype(o_ref.dtype)


def _round_up(x, m):
    return -(-x // m) * m


def _vmem_limit_bytes():
    """Per-generation scoped-VMEM budget (conservative if the query fails)."""
    phys = None
    try:
        phys = getattr(pltpu.get_tpu_info(), "vmem_capacity_bytes", None)
    except Exception:
        phys = None
    if not phys:
        phys = 64 * 1024 * 1024            # assume v7x (smallest VMEM)
    # <= ~75% of physical; never above ~100 MiB even on 128 MiB v5e/v6e.
    return int(min(phys * 3 // 4, 100 * 1024 * 1024))


def _default_batch_tile(B, T, in_dim, latent, in_itemsize, tile_budget_bytes):
    """Largest divisor of B whose VMEM footprint fits the budget, preferring
    >= 4 grid steps (>= 2 at minimum) so megacore sharding and x
    double-buffering actually engage."""
    lane = lambda d: _round_up(max(d, 1), 128)
    # Per batch row held in VMEM at once:
    #   2 double-buffered x blocks (lane-padded)  +  the pre_x f32 temp that
    #   BlockSpec accounting never sees  +  small h / logits slack.
    per_row = (2 * T * lane(in_dim) * in_itemsize
               + T * lane(latent) * 4
               + 4 * lane(latent) * 4)
    cap = max(1, tile_budget_bytes // per_row)
    divisors = [d for d in range(1, B + 1) if B % d == 0]
    for min_steps in (4, 2, 1):
        ok = [d for d in divisors if d <= cap and B // d >= min_steps]
        if ok:
            return max(ok)
    return 1


def rnn_forward(x, w_lin, w_dec, b_dec, *, batch_tile=None, mxu_dtype=None):
    """x: (B, T, in_dim) f32.  w_lin: (latent, in_dim+latent) (no bias).
    w_dec: (out_dim, latent).  b_dec: (out_dim,).  Returns (B, out_dim) f32.

    mxu_dtype: optional narrow dtype (e.g. jnp.bfloat16) for the streamed x
    and the MXU-fed weights; accumulation, h, tanh and bias stay f32."""
    B, T, in_dim = x.shape
    latent = w_lin.shape[0]
    out_dim = w_dec.shape[0]
    assert w_lin.shape == (latent, in_dim + latent)

    vmem_limit = _vmem_limit_bytes()
    in_dtype = jnp.dtype(mxu_dtype) if mxu_dtype is not None else jnp.dtype(jnp.float32)
    if batch_tile is None:
        # Leave ~half the scoped budget for weights / output / headroom.
        batch_tile = _default_batch_tile(B, T, in_dim, latent,
                                         in_dtype.itemsize, vmem_limit // 2)
    tb = min(batch_tile, B)
    assert B % tb == 0, "batch_tile must divide B"
    nb = B // tb                            # grid steps (>= 2 whenever B >= 2)

    # --- Per-call input massaging (tiny HBM-side XLA ops) -------------------
    # One transpose so timesteps are the leading axis; the batch is split
    # (nb, tb) so the batch-tile / feature dims are full array dims.
    xt = jnp.transpose(x, (1, 0, 2)).reshape(T, nb, tb, in_dim)
    # Exact weight split of cat([x, h]) @ W_lin^T; weights keep their native
    # (out, in) orientation — the kernel contracts on the last axes (NT).
    wx = w_lin[:, :in_dim]                  # (latent, in_dim)
    wh = w_lin[:, in_dim:]                  # (latent, latent)
    # Lane-dense output: zero-pad the decoder to 128 output lanes.
    out_pad = _round_up(out_dim, 128)
    wd = jnp.zeros((out_pad, latent), w_dec.dtype).at[:out_dim].set(w_dec)
    b2d = jnp.zeros((1, out_pad), jnp.float32).at[0, :out_dim].set(
        b_dec.astype(jnp.float32))
    if mxu_dtype is not None:
        xt, wx, wh, wd = (a.astype(mxu_dtype) for a in (xt, wx, wh, wd))

    out = pl.pallas_call(
        rnn_kernel,
        out_shape=jax.ShapeDtypeStruct((nb, tb, out_pad), jnp.float32),
        grid_spec=pltpu.PrefetchScalarGridSpec(
            num_scalar_prefetch=0,
            grid=(nb,),
            in_specs=[
                pl.BlockSpec((T, 1, tb, in_dim), lambda i: (0, i, 0, 0)),
                pl.BlockSpec((latent, in_dim), lambda i: (0, 0)),
                pl.BlockSpec((latent, latent), lambda i: (0, 0)),
                pl.BlockSpec((out_pad, latent), lambda i: (0, 0)),
                pl.BlockSpec((1, out_pad), lambda i: (0, 0)),
            ],
            out_specs=pl.BlockSpec((1, tb, out_pad), lambda i: (i, 0, 0)),
        ),
        compiler_params=pltpu.CompilerParams(
            # Independent batch tiles: shard across both TCs on v7x,
            # harmless no-op on single-TC v5e/v6e.
            dimension_semantics=("parallel",),
            vmem_limit_bytes=vmem_limit,
        ),
    )(xt, wx, wh, wd, b2d)

    return out.reshape(B, out_pad)[:, :out_dim]


def rnn_reference(x, w_lin, w_dec, b_dec):
    """Pure-JAX reference matching the PyTorch forward exactly."""
    B, T, _ = x.shape
    latent = w_lin.shape[0]
    h = jnp.zeros((B, latent), dtype=jnp.float32)
    for i in range(T):
        combined = jnp.concatenate([x[:, i, :], h], axis=1)
        h = jnp.tanh(combined @ w_lin.T)
    return jnp.tanh(h @ w_dec.T + b_dec)


if __name__ == "__main__":
    # Small shapes consistent with the module's forward.
    B, T, in_dim, latent, out_dim = 2, 8, 16, 32, 8

    key = jax.random.PRNGKey(0)
    k_x, k_lin, k_dec_w, k_dec_b = jax.random.split(key, 4)

    x = jax.random.normal(k_x, (B, T, in_dim), dtype=jnp.float32)
    # Deterministic parameter init (PyTorch-Linear-like uniform scale).
    s_lin = 1.0 / jnp.sqrt(in_dim + latent)
    w_lin = jax.random.uniform(k_lin, (latent, in_dim + latent),
                               minval=-s_lin, maxval=s_lin, dtype=jnp.float32)
    s_dec = 1.0 / jnp.sqrt(latent)
    w_dec = jax.random.uniform(k_dec_w, (out_dim, latent),
                               minval=-s_dec, maxval=s_dec, dtype=jnp.float32)
    b_dec = jax.random.uniform(k_dec_b, (out_dim,),
                               minval=-s_dec, maxval=s_dec, dtype=jnp.float32)

    ref = rnn_reference(x, w_lin, w_dec, b_dec)

    # f32 path (exact vs reference).
    out = rnn_forward(x, w_lin, w_dec, b_dec)
    jax.block_until_ready(out)
    assert out.shape == (B, out_dim)
    assert jnp.allclose(out, ref, atol=1e-5, rtol=1e-5), "f32 mismatch vs reference"

    # bf16 MXU-feed path (production option); tanh / accumulation stay f32.
    out_bf16 = rnn_forward(x, w_lin, w_dec, b_dec, mxu_dtype=jnp.bfloat16)
    jax.block_until_ready(out_bf16)
    assert out_bf16.shape == (B, out_dim)
    assert jnp.allclose(out_bf16, ref, atol=5e-2, rtol=5e-2), "bf16 mismatch vs reference"

    print("KERNEL_OK")
</pallas_src>

<mosaic_0001>
module attributes {stable_mosaic.version = 11 : i64} {
  func.func @rnn_kernel(%arg0: i32, %arg1: memref<8x1x1x16xf32, #tpu.memory_space<vmem>>, %arg2: memref<32x16xf32, #tpu.memory_space<vmem>>, %arg3: memref<32x32xf32, #tpu.memory_space<vmem>>, %arg4: memref<128x32xf32, #tpu.memory_space<vmem>>, %arg5: memref<1x128xf32, #tpu.memory_space<vmem>>, %arg6: memref<1x1x128xf32, #tpu.memory_space<vmem>>) attributes {dimension_semantics = [#tpu.dimension_semantics<parallel>], iteration_bounds = array<i64: 2>, scalar_prefetch = 0 : i64, scratch_operands = 0 : i64, tpu.core_type = #tpu.core_type<tc>, window_params = [{transform_indices = @transform_0, window_bounds = array<i64: 8, 1, 1, 16>}, {pipeline_mode = #tpu.pipeline_mode<synchronous>, transform_indices = @transform_1, window_bounds = array<i64: 32, 16>}, {pipeline_mode = #tpu.pipeline_mode<synchronous>, transform_indices = @transform_2, window_bounds = array<i64: 32, 32>}, {pipeline_mode = #tpu.pipeline_mode<synchronous>, transform_indices = @transform_3, window_bounds = array<i64: 128, 32>}, {pipeline_mode = #tpu.pipeline_mode<synchronous>, transform_indices = @transform_4, window_bounds = array<i64: 1, 128>}, {transform_indices = @transform_5, window_bounds = array<i64: 1, 1, 128>}]} {
    %c0 = arith.constant 0 : index
    %c0_0 = arith.constant 0 : index
    %0 = vector.load %arg3[%c0, %c0_0] : memref<32x32xf32, #tpu.memory_space<vmem>>, vector<32x32xf32>
    %c0_1 = arith.constant 0 : index
    %c0_2 = arith.constant 0 : index
    %c0_3 = arith.constant 0 : index
    %c0_4 = arith.constant 0 : index
    %1 = vector.load %arg1[%c0_1, %c0_2, %c0_3, %c0_4] : memref<8x1x1x16xf32, #tpu.memory_space<vmem>>, vector<8x1x1x16xf32>
    %2 = vector.shape_cast %1 : vector<8x1x1x16xf32> to vector<8x16xf32>
    %c0_5 = arith.constant 0 : index
    %c0_6 = arith.constant 0 : index
    %3 = vector.load %arg2[%c0_5, %c0_6] : memref<32x16xf32, #tpu.memory_space<vmem>>, vector<32x16xf32>
    %cst = arith.constant dense<0.000000e+00> : vector<8x32xf32>
    %4 = tpu.matmul %2, %3, %cst {dimension_numbers = #tpu.dot_dimension_numbers<[1], [1], [0], [0], [0, 0, 1, 0], [], []>} : vector<8x16xf32>, vector<32x16xf32>, vector<8x32xf32> -> vector<8x32xf32>
    %5 = vector.shape_cast %4 : vector<8x32xf32> to vector<8x1x32xf32>
    %6 = vector.extract_strided_slice %5 {offsets = [0, 0, 0], sizes = [1, 1, 32], strides = [1, 1, 1]} : vector<8x1x32xf32> to vector<1x1x32xf32>
    %7 = vector.shape_cast %6 : vector<1x1x32xf32> to vector<1x32xf32>
    %8 = math.tanh %7 : vector<1x32xf32>
    %cst_7 = arith.constant dense<0.000000e+00> : vector<1x32xf32>
    %9 = tpu.matmul %8, %0, %cst_7 {dimension_numbers = #tpu.dot_dimension_numbers<[1], [1], [0], [0], [0, 0, 1, 0], [], []>} : vector<1x32xf32>, vector<32x32xf32>, vector<1x32xf32> -> vector<1x32xf32>
    %10 = vector.extract_strided_slice %5 {offsets = [1, 0, 0], sizes = [1, 1, 32], strides = [1, 1, 1]} : vector<8x1x32xf32> to vector<1x1x32xf32>
    %11 = vector.shape_cast %10 : vector<1x1x32xf32> to vector<1x32xf32>
    %12 = arith.addf %11, %9 : vector<1x32xf32>
    %13 = math.tanh %12 : vector<1x32xf32>
    %cst_8 = arith.constant dense<0.000000e+00> : vector<1x32xf32>
    %14 = tpu.matmul %13, %0, %cst_8 {dimension_numbers = #tpu.dot_dimension_numbers<[1], [1], [0], [0], [0, 0, 1, 0], [], []>} : vector<1x32xf32>, vector<32x32xf32>, vector<1x32xf32> -> vector<1x32xf32>
    %15 = vector.extract_strided_slice %5 {offsets = [2, 0, 0], sizes = [1, 1, 32], strides = [1, 1, 1]} : vector<8x1x32xf32> to vector<1x1x32xf32>
    %16 = vector.shape_cast %15 : vector<1x1x32xf32> to vector<1x32xf32>
    %17 = arith.addf %16, %14 : vector<1x32xf32>
    %18 = math.tanh %17 : vector<1x32xf32>
    %cst_9 = arith.constant dense<0.000000e+00> : vector<1x32xf32>
    %19 = tpu.matmul %18, %0, %cst_9 {dimension_numbers = #tpu.dot_dimension_numbers<[1], [1], [0], [0], [0, 0, 1, 0], [], []>} : vector<1x32xf32>, vector<32x32xf32>, vector<1x32xf32> -> vector<1x32xf32>
    %20 = vector.extract_strided_slice %5 {offsets = [3, 0, 0], sizes = [1, 1, 32], strides = [1, 1, 1]} : vector<8x1x32xf32> to vector<1x1x32xf32>
    %21 = vector.shape_cast %20 : vector<1x1x32xf32> to vector<1x32xf32>
    %22 = arith.addf %21, %19 : vector<1x32xf32>
    %23 = math.tanh %22 : vector<1x32xf32>
    %cst_10 = arith.constant dense<0.000000e+00> : vector<1x32xf32>
    %24 = tpu.matmul %23, %0, %cst_10 {dimension_numbers = #tpu.dot_dimension_numbers<[1], [1], [0], [0], [0, 0, 1, 0], [], []>} : vector<1x32xf32>, vector<32x32xf32>, vector<1x32xf32> -> vector<1x32xf32>
    %25 = vector.extract_strided_slice %5 {offsets = [4, 0, 0], sizes = [1, 1, 32], strides = [1, 1, 1]} : vector<8x1x32xf32> to vector<1x1x32xf32>
    %26 = vector.shape_cast %25 : vector<1x1x32xf32> to vector<1x32xf32>
    %27 = arith.addf %26, %24 : vector<1x32xf32>
    %28 = math.tanh %27 : vector<1x32xf32>
    %cst_11 = arith.constant dense<0.000000e+00> : vector<1x32xf32>
    %29 = tpu.matmul %28, %0, %cst_11 {dimension_numbers = #tpu.dot_dimension_numbers<[1], [1], [0], [0], [0, 0, 1, 0], [], []>} : vector<1x32xf32>, vector<32x32xf32>, vector<1x32xf32> -> vector<1x32xf32>
    %30 = vector.extract_strided_slice %5 {offsets = [5, 0, 0], sizes = [1, 1, 32], strides = [1, 1, 1]} : vector<8x1x32xf32> to vector<1x1x32xf32>
    %31 = vector.shape_cast %30 : vector<1x1x32xf32> to vector<1x32xf32>
    %32 = arith.addf %31, %29 : vector<1x32xf32>
    %33 = math.tanh %32 : vector<1x32xf32>
    %cst_12 = arith.constant dense<0.000000e+00> : vector<1x32xf32>
    %34 = tpu.matmul %33, %0, %cst_12 {dimension_numbers = #tpu.dot_dimension_numbers<[1], [1], [0], [0], [0, 0, 1, 0], [], []>} : vector<1x32xf32>, vector<32x32xf32>, vector<1x32xf32> -> vector<1x32xf32>
    %35 = vector.extract_strided_slice %5 {offsets = [6, 0, 0], sizes = [1, 1, 32], strides = [1, 1, 1]} : vector<8x1x32xf32> to vector<1x1x32xf32>
    %36 = vector.shape_cast %35 : vector<1x1x32xf32> to vector<1x32xf32>
    %37 = arith.addf %36, %34 : vector<1x32xf32>
    %38 = math.tanh %37 : vector<1x32xf32>
    %cst_13 = arith.constant dense<0.000000e+00> : vector<1x32xf32>
    %39 = tpu.matmul %38, %0, %cst_13 {dimension_numbers = #tpu.dot_dimension_numbers<[1], [1], [0], [0], [0, 0, 1, 0], [], []>} : vector<1x32xf32>, vector<32x32xf32>, vector<1x32xf32> -> vector<1x32xf32>
    %40 = vector.extract_strided_slice %5 {offsets = [7, 0, 0], sizes = [1, 1, 32], strides = [1, 1, 1]} : vector<8x1x32xf32> to vector<1x1x32xf32>
    %41 = vector.shape_cast %40 : vector<1x1x32xf32> to vector<1x32xf32>
    %42 = arith.addf %41, %39 : vector<1x32xf32>
    %43 = math.tanh %42 : vector<1x32xf32>
    %c0_14 = arith.constant 0 : index
    %c0_15 = arith.constant 0 : index
    %44 = vector.load %arg4[%c0_14, %c0_15] : memref<128x32xf32, #tpu.memory_space<vmem>>, vector<128x32xf32>
    %cst_16 = arith.constant dense<0.000000e+00> : vector<1x128xf32>
    %45 = tpu.matmul %43, %44, %cst_16 {dimension_numbers = #tpu.dot_dimension_numbers<[1], [1], [0], [0], [0, 0, 1, 0], [], []>} : vector<1x32xf32>, vector<128x32xf32>, vector<1x128xf32> -> vector<1x128xf32>
    %c0_17 = arith.constant 0 : index
    %c0_18 = arith.constant 0 : index
    %46 = vector.load %arg5[%c0_17, %c0_18] : memref<1x128xf32, #tpu.memory_space<vmem>>, vector<1x128xf32>
    %47 = arith.addf %45, %46 : vector<1x128xf32>
    %48 = math.tanh %47 : vector<1x128xf32>
    %c0_19 = arith.constant 0 : index
    %c0_20 = arith.constant 0 : index
    %c0_21 = arith.constant 0 : index
    %49 = vector.load %arg6[%c0_19, %c0_20, %c0_21] : memref<1x1x128xf32, #tpu.memory_space<vmem>>, vector<1x1x128xf32>
    %50 = vector.shape_cast %49 : vector<1x1x128xf32> to vector<1x128xf32>
    %51 = vector.shape_cast %48 : vector<1x128xf32> to vector<1x1x128xf32>
    tpu.vector_store %arg6[%c0_19, %c0_20, %c0_21], %51 {strides = array<i32>} : memref<1x1x128xf32, #tpu.memory_space<vmem>>, vector<1x1x128xf32>,
    return
  }
  func.func @transform_0(%arg0: i32) -> (i32, i32, i32, i32) {
    %c0_i32 = arith.constant 0 : i32
    %c0_i32_0 = arith.constant 0 : i32
    %c0_i32_1 = arith.constant 0 : i32
    %c0_i32_2 = arith.constant 0 : i32
    return %c0_i32, %arg0, %c0_i32_0, %c0_i32_1 : i32, i32, i32, i32
  }
  func.func @transform_1(%arg0: i32) -> (i32, i32) {
    %c0_i32 = arith.constant 0 : i32
    %c0_i32_0 = arith.constant 0 : i32
    %c0_i32_1 = arith.constant 0 : i32
    return %c0_i32, %c0_i32_0 : i32, i32
  }
  func.func @transform_2(%arg0: i32) -> (i32, i32) {
    %c0_i32 = arith.constant 0 : i32
    %c0_i32_0 = arith.constant 0 : i32
    %c0_i32_1 = arith.constant 0 : i32
    return %c0_i32, %c0_i32_0 : i32, i32
  }
  func.func @transform_3(%arg0: i32) -> (i32, i32) {
    %c0_i32 = arith.constant 0 : i32
    %c0_i32_0 = arith.constant 0 : i32
    %c0_i32_1 = arith.constant 0 : i32
    return %c0_i32, %c0_i32_0 : i32, i32
  }
  func.func @transform_4(%arg0: i32) -> (i32, i32) {
    %c0_i32 = arith.constant 0 : i32
    %c0_i32_0 = arith.constant 0 : i32
    %c0_i32_1 = arith.constant 0 : i32
    return %c0_i32, %c0_i32_0 : i32, i32
  }
  func.func @transform_5(%arg0: i32) -> (i32, i32, i32) {
    %c0_i32 = arith.constant 0 : i32
    %c0_i32_0 = arith.constant 0 : i32
    %c0_i32_1 = arith.constant 0 : i32
    return %arg0, %c0_i32, %c0_i32_0 : i32, i32, i32
  }
}

</mosaic_0001>

<bundles_post_ra>
// kernel: tpu_custom_call.1
= control target key start
LH: loop header
LB: loop body
LE: loop exit
PB: predicated region body
PF: predicated region fallthrough
CT: control target
= control target key end

     0   :  { %10 = vsyncpa [#allocation4], 0  ;;  %s1209_s0 = inlined_call_operand.vmem [shape: f32[8,2,1,16], index: 0, kind: input, shape index: {}]   ;;  %s1210_s1 = inlined_call_operand.vmem [shape: f32[32,16], index: 1, kind: input, shape index: {}]   ;;  %s1211_s2 = inlined_call_operand.vmem [shape: f32[32,32], index: 2, kind: input, shape index: {}]   ;;  %s1212_s3 = inlined_call_operand.vmem [shape: f32[128,32], index: 3, kind: input, shape index: {}]   ;;  %s1213_s4 = inlined_call_operand.vmem [shape: f32[1,128], index: 4, kind: input, shape index: {}]   ;;  %s1214_s5 = inlined_call_operand.hbm [shape: f32[2,1,128], index: 5, kind: output, shape index: {}]  }
   0x1   :  { %12 = vsyncpa [#allocation4 + $0x1], 0  ;;  %s963_s18 = smov 0   ;;  %s965_s19 = smov 0  }
   0x2   :  { %s967_s20 = smov 0   ;;  %s969_s21 = smov 0  }
   0x3 LB: > { %s746_s22 = sadd.s32 4294967295, %s931_s21   ;;  %s747_s23 = sadd.s32 4294967294, %s931_s21   ;;  %s931_s21 = sphi %s969_s21, %s1220_s21   ;;  %s927_s20 = sphi %s967_s20, %s1219_s20   ;;  %s923_s19 = sphi %s965_s19, %s1218_s19   ;;  %s919_s18 = sphi %s963_s18, %s1217_s18  }
   0x4   : > { %s986_s24 = sadd.s32 1, %s931_s21   ;;  %s25_s25 = sadd.s32 1, %s927_s20 }
   0x5   : > { %s22_s26 = ssub.s32 %s931_s21, %s986_s24  ;;  %p32_p0 = scmp.ne.s32.totalorder %s927_s20, %s923_s19 }
   0x6   : > { %p23_p1 = scmp.eq.s32.totalorder %s22_s26, 0  ;;  %p33_p2 = scmp.eq.s32.totalorder %s931_s21, 0 }
   0x7   : > { %p146_p3 = scmp.eq.s32.totalorder %s746_s22, 1  ;;  %p151_p4 = scmp.ne.s32.totalorder %s923_s19, %s919_s18 }
   0x8   : > { %s999_s27 = scalar_select %p23_p1, %s927_s20, %s25_s25  }
   0x9   : > { %p34_p5 = por %p33_p2, %p32_p0  ;;  %p1001_p6 = por %p146_p3, %p32_p0 }
   0xa   : > { %p152_p7 = scmp.eq.s32.totalorder %s747_s23, 1  ;;  %p749_p9 = scmp.ge.s32.totalorder %s931_s21, 2 }
   0xc   : > { %p1005_p8 = por %p152_p7, %p151_p4  ;;  %180 = sbr.rel (%p749_p9) target bundleno = 29 (0x1d), region = 32 }
  0x11   : > { %183 = sbr.rel (!%p34_p5) target bundleno = 29 (0x1d), region = 36  ;;  %s185_s30 = sand.u32 (%p34_p5), 1, %s927_s20  }
  0x12   : > { %s188_s8 = scalar_lea.vmem (%p34_p5), %s1209_s0, %s931_s21  ;;  %s750_s9 = sshll.u32 (%p34_p5), %s185_s30, 3 }
  0x13   : > { %v205_v0 = vld [vmem:[%s188_s8] sm:$0x1] (%p34_p5)  ;;  %v207_v1 = vld [vmem:[%s188_s8 + $0x2] sm:$0x1] (%p34_p5)  ;;  %v209_v2 = vld [vmem:[%s188_s8 + $0x4] sm:$0x1] (%p34_p5) }
  0x14   : > { %s187_s10 = scalar_lea.vmem (%p34_p5), [#allocation2], %s750_s9  ;;  %v211_v3 = vld [vmem:[%s188_s8 + $0x6] sm:$0x1] (%p34_p5)  ;;  %v213_v4 = vld [vmem:[%s188_s8 + $0x8] sm:$0x1] (%p34_p5) }
  0x15   : > { %206 = vst [vmem:[%s187_s10] sm:$0x1] (%p34_p5), %v205_v0  ;;  %v215_v5 = vld [vmem:[%s188_s8 + $0xa] sm:$0x1] (%p34_p5)  ;;  %v217_v6 = vld [vmem:[%s188_s8 + $0xc] sm:$0x1] (%p34_p5) }
  0x16   : > { %208 = vst [vmem:[%s187_s10 + $0x1] sm:$0x1] %v207_v1  ;;  %v219_v7 = vld [vmem:[%s188_s8 + $0xe] sm:$0x1] }
  0x17   : > { %210 = vst [vmem:[%s187_s10 + $0x2] sm:$0x1] %v209_v2 }
  0x18   : > { %212 = vst [vmem:[%s187_s10 + $0x3] sm:$0x1] %v211_v3 }
  0x19   : > { %214 = vst [vmem:[%s187_s10 + $0x4] sm:$0x1] %v213_v4 }
  0x1a   : > { %216 = vst [vmem:[%s187_s10 + $0x5] sm:$0x1] %v215_v5 }
  0x1b   : > { %218 = vst [vmem:[%s187_s10 + $0x6] sm:$0x1] %v217_v6 }
  0x1c   : > { %220 = vst [vmem:[%s187_s10 + $0x7] sm:$0x1] %v219_v7 }
  0x1d PF: > { %p751_p10 = scmp.ge.s32.totalorder %s931_s21, 1  ;;  %p259_p11 = scmp.lt.s32.totalorder %s931_s21, 3 }
  0x1f   : > { %p260_p12 = pnand %p751_p10, %p259_p11 }
  0x20   : > { %s1023_s13 = sand.u32 (!%p260_p12), 1, %s923_s19   ;;  %s683_s30 = scalar_lea.hbm (!%p260_p12), %s1214_s5, %s746_s22 }
  0x21   : > { %263 = sbr.rel (%p260_p12) target bundleno = 1330 (0x532), region = 77  ;;  %s752_s14 = sshll.u32 (!%p260_p12), %s1023_s13, 3 }
  0x22   : > { %s268_s25 = scalar_lea.vmem (!%p260_p12), [#allocation2], %s752_s14  ;;  %s291_s6 = scalar_lea.vmem (!%p260_p12), [#allocation3], %s1023_s13 }
  0x23   : > { %s685_s7 = sshll.u32 (!%p260_p12), %s291_s6, 4  ;;  %s687_s8 = sshll.u32 (!%p260_p12), %s683_s30, 4  ;;  %s686_s7 = int_to_ptr.vmem [resolvable:$true] %s685_s7  ;;  %s688_s8 = int_to_ptr.hbm [resolvable:$true] %s687_s8 }
  0x24   : > { %s675_s9 = scalar_lea.sflag (!%p260_p12), [#allocation4], %s1023_s13  ;;  %s883_s10 = sshra.s32 (!%p260_p12), %s688_s8, 4  ;;  %s884_s10 = int_to_ptr.hbm [resolvable:$true] %s883_s10 }
  0x25   : > { %s885_s11 = scalar_lea.hbm (!%p260_p12), %s884_s10, 1  ;;  %s889_s22 = scalar_lea.hbm (!%p260_p12), %s1214_s5, 2 }
  0x26   : > { %v307_v8 = vld [vmem:[%s1210_s1 + $0x18] sm:$0xff]  ;;  %vm332_vm0 = vcmask 130048   ;;  %vm368_vm1 = vcmask 261120   ;;  %v306_v10 = vld [vmem:[%s1210_s1 + $0x10] sm:$0xff]  ;;  %v305_v16 = vld [vmem:[%s1210_s1 + $0x8] sm:$0xff]  ;;  %p886_p13 = scmp.ne.s32.totalorder %s884_s10, %s885_s11  ;;  %p890_p2 = scmp.lt.s32.totalorder %s884_s10, %s1214_s5 }
  0x27   : > { %753 = vmatpush.xpose.msk.msra.mxu1 %vm332_vm0, %v307_v8  ;;  %v1030_v9 = vld [vmem:[%s1211_s2 + $0x18] sm:$0xff]  ;;  %v296_v11 = vld [vmem:[%s268_s25] sm:$0x1]  ;;  %v297_v12 = vld [vmem:[%s268_s25 + $0x1] sm:$0x1]  ;;  %p891_p3 = scmp.lt.s32.totalorder %s889_s22, %s885_s11 }
  0x28   : > { %763 = vmatpush.xpose.msk.msra.mxu2 %vm368_vm1, %v1030_v9  ;;  %768 = vmatpush.xpose.msk.msra.mxu3 %vm368_vm1, %v1030_v9  ;;  %v298_v13 = vld [vmem:[%s268_s25 + $0x2] sm:$0x1]  ;;  %v299_v14 = vld [vmem:[%s268_s25 + $0x3] sm:$0x1]  ;;  %316 = vst [vmem:[#allocation1] ss:$9 sm:$0xff] %v296_v11  ;;  %p887_p0 = pnand %p886_p13, %p1001_p6 }
  0x29   : > { %v294_v15 = vld [vmem:[%s1211_s2 + $0x10] sm:$0xff]  ;;  %318 = vst [vmem:[#allocation1 + $0x1] ss:$9 sm:$0xff] %v297_v12  ;;  %v304_v21 = vld [vmem:[%s1210_s1] sm:$0xff]  ;;  %v293_v23 = vld [vmem:[%s1211_s2 + $0x8] sm:$0xff]  ;;  %p892_p4 = por %p891_p3, %p890_p2 }
  0x2a   : > { %v300_v17 = vld [vmem:[%s268_s25 + $0x4] sm:$0x1]  ;;  %v301_v18 = vld [vmem:[%s268_s25 + $0x5] sm:$0x1]  ;;  %320 = vst [vmem:[#allocation1 + $0x2] ss:$9 sm:$0xff] %v298_v13  ;;  %p888_p1 = pneg %p887_p0 }
  0x2b   : > { %754 = vmatpush.xpose.msk.msra.mxu1 %vm332_vm0, %v306_v10  ;;  %v302_v19 = vld [vmem:[%s268_s25 + $0x6] sm:$0x1]  ;;  %322 = vst [vmem:[#allocation1 + $0x3] ss:$9 sm:$0xff] %v299_v14  ;;  %v303_v20 = vld [vmem:[%s268_s25 + $0x7] sm:$0x1] }
  0x2c   : > { %764 = vmatpush.xpose.msk.msra.mxu2 %vm368_vm1, %v294_v15  ;;  %769 = vmatpush.xpose.msk.msra.mxu3 %vm368_vm1, %v294_v15  ;;  %324 = vst [vmem:[#allocation1 + $0x4] ss:$9 sm:$0xff] %v300_v17  ;;  %v292_v24 = vld [vmem:[%s1211_s2] sm:$0xff]  ;;  %v598_v52 = vld [vmem:[%s1212_s3 + $0x78] sm:$0xff]  ;;  %v597_v53 = vld [vmem:[%s1212_s3 + $0x70] sm:$0xff]  ;;  %p893_p5 = pnand %p892_p4, %p888_p1 }
  0x2d   : > { %326 = vst [vmem:[#allocation1 + $0x5] ss:$9 sm:$0xff] %v301_v18  ;;  %793 = vmatpush.xpose.msk.msra.mxu0 %vm368_vm1, %v598_v52  ;;  %v596_v54 = vld [vmem:[%s1212_s3 + $0x68] sm:$0xff]  ;;  %v595_v55 = vld [vmem:[%s1212_s3 + $0x60] sm:$0xff]  ;;  %v594_v56 = vld [vmem:[%s1212_s3 + $0x58] sm:$0xff] }
  0x2e   : > { %328 = vst [vmem:[#allocation1 + $0x6] ss:$9 sm:$0xff] %v302_v19  ;;  %v593_v58 = vld [vmem:[%s1212_s3 + $0x50] sm:$0xff]  ;;  %v592_v61 = vld [vmem:[%s1212_s3 + $0x48] sm:$0xff]  ;;  %v591_v62 = vld [vmem:[%s1212_s3 + $0x40] sm:$0xff] }
  0x2f   : > { %755 = vmatpush.xpose.msk.msra.mxu1 %vm332_vm0, %v305_v16  ;;  %330 = vst [vmem:[#allocation1 + $0x7] ss:$9 sm:$0xff] %v303_v20  ;;  %v590_v1 = vld [vmem:[%s1212_s3 + $0x38] sm:$0xff]  ;;  %v589_v2 = vld [vmem:[%s1212_s3 + $0x30] sm:$0xff]  ;;  %v588_v3 = vld [vmem:[%s1212_s3 + $0x28] sm:$0xff] }
  0x30   : > { %765 = vmatpush.xpose.msk.msra.mxu2 %vm368_vm1, %v293_v23  ;;  %770 = vmatpush.xpose.msk.msra.mxu3 %vm368_vm1, %v293_v23  ;;  %v587_v4 = vld [vmem:[%s1212_s3 + $0x20] sm:$0xff]  ;;  %v586_v5 = vld [vmem:[%s1212_s3 + $0x18] sm:$0xff]  ;;  %v585_v6 = vld [vmem:[%s1212_s3 + $0x10] sm:$0xff] }
  0x31   : > { %794 = vmatpush.xpose.msk.msra.mxu0 %vm368_vm1, %v597_v53  ;;  %v584_v7 = vld [vmem:[%s1212_s3 + $0x8] sm:$0xff]  ;;  %v583_v8 = vld [vmem:[%s1212_s3] sm:$0xff] }
  0x32   : > { %v599_v14 = vld [vmem:[%s1213_s4] sm:$0x1] }
  0x33   : > { %756 = vmatpush.xpose.msk.msra.mxu1 %vm332_vm0, %v304_v21 }
  0x34   : > { %766 = vmatpush.xpose.msk.msra.mxu2 %vm368_vm1, %v292_v24  ;;  %771 = vmatpush.xpose.msk.msra.mxu3 %vm368_vm1, %v292_v24 }
  0x35   : > { %795 = vmatpush.xpose.msk.msra.mxu0 %vm368_vm1, %v596_v54 }
  0x36   : > { %v331_v22 = vld [vmem:[#allocation1] sm:$0xff] }
  0x37   : > { %758 = vmatpush.xpose.msk.msrb.mxu1 %vm368_vm1, %v1030_v9 }
  0x38   : > { %757 = vmatmul.msk.f32.vlgmr.msra.gmra.mxu1 %vm332_vm0, %v331_v22  ;;  %773 = vmatpush.xpose.msk.msrb.mxu2 %vm368_vm1, %v1030_v9 }
  0x39   : > { %788 = vmatpush.xpose.msk.msrb.mxu3 %vm368_vm1, %v1030_v9  ;;  %796 = vmatpush.xpose.msk.msra.mxu0 %vm368_vm1, %v595_v55 }
  0x3b   : > { %759 = vmatpush.xpose.msk.msrb.mxu1 %vm368_vm1, %v294_v15 }
  0x3c   : > { %774 = vmatpush.xpose.msk.msrb.mxu2 %vm368_vm1, %v294_v15 }
  0x3d   : > { %789 = vmatpush.xpose.msk.msrb.mxu3 %vm368_vm1, %v294_v15  ;;  %797 = vmatpush.xpose.msk.msra.mxu0 %vm368_vm1, %v594_v56 }
  0x3f   : > { %760 = vmatpush.xpose.msk.msrb.mxu1 %vm368_vm1, %v293_v23 }
  0x40   : > { %775 = vmatpush.xpose.msk.msrb.mxu2 %vm368_vm1, %v293_v23 }
  0x41   : > { %790 = vmatpush.xpose.msk.msrb.mxu3 %vm368_vm1, %v293_v23  ;;  %798 = vmatpush.xpose.msk.msra.mxu0 %vm368_vm1, %v593_v58 }
  0x43   : > { %761 = vmatpush.xpose.msk.msrb.mxu1 %vm368_vm1, %v292_v24 }
  0x44   : > { %776 = vmatpush.xpose.msk.msrb.mxu2 %vm368_vm1, %v292_v24 }
  0x45   : > { %791 = vmatpush.xpose.msk.msrb.mxu3 %vm368_vm1, %v292_v24  ;;  %799 = vmatpush.xpose.msk.msra.mxu0 %vm368_vm1, %v592_v61 }
  0x47   : > { %778 = vmatpush.xpose.msk.msra.mxu1 %vm368_vm1, %v1030_v9 }
  0x49   : > { %800 = vmatpush.xpose.msk.msra.mxu0 %vm368_vm1, %v591_v62 }
  0x4b   : > { %779 = vmatpush.xpose.msk.msra.mxu1 %vm368_vm1, %v294_v15 }
  0x4d   : > { %801 = vmatpush.xpose.msk.msra.mxu0 %vm368_vm1, %v590_v1 }
  0x4f   : > { %780 = vmatpush.xpose.msk.msra.mxu1 %vm368_vm1, %v293_v23 }
  0x51   : > { %802 = vmatpush.xpose.msk.msra.mxu0 %vm368_vm1, %v589_v2 }
  0x53   : > { %781 = vmatpush.xpose.msk.msra.mxu1 %vm368_vm1, %v292_v24 }
  0x55   : > { %803 = vmatpush.xpose.msk.msra.mxu0 %vm368_vm1, %v588_v3 }
  0x59   : > { %804 = vmatpush.xpose.msk.msra.mxu0 %vm368_vm1, %v587_v4 }
  0x5d   : > { %805 = vmatpush.xpose.msk.msra.mxu0 %vm368_vm1, %v586_v5 }
  0x61   : > { %806 = vmatpush.xpose.msk.msra.mxu0 %vm368_vm1, %v585_v6 }
  0x65   : > { %807 = vmatpush.xpose.msk.msra.mxu0 %vm368_vm1, %v584_v7 }
  0x69   : > { %808 = vmatpush.xpose.msk.msra.mxu0 %vm368_vm1, %v583_v8 }
  0xb5   : > { %v1084_v25 = vpop.f32.mrf.mxu1 }
  0xb6   : > { %851 = vtanh.f32 %v1084_v25 }
  0xbc   : > { %v852_v26 = vpop.eup %851 }
  0xbd   : > { %762 = vmatmul.msk.f32.vlgmr.msrb.gmra.mxu1 %vm368_vm1, %v852_v26 }
 0x13a   : > { %v401_v27 = vpop.f32.mrf.mxu1 }
 0x13b   : > { %v405_v28 = vrot.slane %v401_v27, 7 }
 0x13d   : > { %v407_v29 = vadd.f32 %v405_v28, %v1084_v25 }
 0x13f   : > { %853 = vtanh.f32 %v407_v29 }
 0x145   : > { %v854_v30 = vpop.eup %853 }
 0x146   : > { %v410_v31 = vrot.slane %v854_v30, 1 }
 0x148   : > { %767 = vmatmul.msk.f32.vlgmr.msra.gmra.mxu2 %vm368_vm1, %v410_v31 }
 0x149   : > { %783 = vmatpush.xpose.msk.msra.mxu2 %vm368_vm1, %v1030_v9 }
 0x14d   : > { %784 = vmatpush.xpose.msk.msra.mxu2 %vm368_vm1, %v294_v15 }
 0x151   : > { %785 = vmatpush.xpose.msk.msra.mxu2 %vm368_vm1, %v293_v23 }
 0x155   : > { %786 = vmatpush.xpose.msk.msra.mxu2 %vm368_vm1, %v292_v24 }
 0x1cb   : > { %v430_v32 = vpop.f32.mrf.mxu2 }
 0x1cc   : > { %v434_v33 = vrot.slane %v430_v32, 6 }
 0x1ce   : > { %v436_v34 = vadd.f32 %v434_v33, %v1084_v25 }
 0x1d0   : > { %855 = vtanh.f32 %v436_v34 }
 0x1d6   : > { %v856_v35 = vpop.eup %855 }
 0x1d7   : > { %v439_v36 = vrot.slane %v856_v35, 2 }
 0x1d9   : > { %772 = vmatmul.msk.f32.vlgmr.msra.gmra.mxu3 %vm368_vm1, %v439_v36 }
 0x25c   : > { %v459_v37 = vpop.f32.mrf.mxu3 }
 0x25d   : > { %v463_v38 = vrot.slane %v459_v37, 5 }
 0x25f   : > { %v465_v39 = vadd.f32 %v463_v38, %v1084_v25 }
 0x261   : > { %857 = vtanh.f32 %v465_v39 }
 0x267   : > { %v858_v40 = vpop.eup %857 }
 0x268   : > { %v468_v41 = vrot.slane %v858_v40, 3 }
 0x26a   : > { %777 = vmatmul.msk.f32.vlgmr.msrb.gmra.mxu2 %vm368_vm1, %v468_v41 }
 0x2ed   : > { %v488_v42 = vpop.f32.mrf.mxu2 }
 0x2ee   : > { %v492_v43 = vrot.slane %v488_v42, 4 }
 0x2f0   : > { %v494_v44 = vadd.f32 %v492_v43, %v1084_v25 }
 0x2f2   : > { %859 = vtanh.f32 %v494_v44 }
 0x2f8   : > { %v860_v45 = vpop.eup %859 }
 0x2f9   : > { %v497_v46 = vrot.slane %v860_v45, 4 }
 0x2fb   : > { %782 = vmatmul.msk.f32.vlgmr.msra.gmra.mxu1 %vm368_vm1, %v497_v46 }
 0x378   : > { %v517_v47 = vpop.f32.mrf.mxu1 }
 0x379   : > { %v521_v48 = vrot.slane %v517_v47, 3 }
 0x37b   : > { %v523_v49 = vadd.f32 %v521_v48, %v1084_v25 }
 0x37d   : > { %861 = vtanh.f32 %v523_v49 }
 0x383   : > { %v862_v50 = vpop.eup %861 }
 0x384   : > { %v526_v51 = vrot.slane %v862_v50, 5 }
 0x386   : > { %787 = vmatmul.msk.f32.vlgmr.msra.gmra.mxu2 %vm368_vm1, %v526_v51 }
 0x409   : > { %v546_v57 = vpop.f32.mrf.mxu2 }
 0x40a   : > { %v550_v59 = vrot.slane %v546_v57, 2 }
 0x40c   : > { %v552_v60 = vadd.f32 %v550_v59, %v1084_v25 }
 0x40e   : > { %863 = vtanh.f32 %v552_v60 }
 0x414   : > { %v864_v63 = vpop.eup %863 }
 0x415   : > { %v555_v0 = vrot.slane %v864_v63, 6 }
 0x417   : > { %792 = vmatmul.msk.f32.vlgmr.msrb.gmra.mxu3 %vm368_vm1, %v555_v0 }
 0x49a   : > { %v575_v9 = vpop.f32.mrf.mxu3 }
 0x49b   : > { %v579_v10 = vrot.slane %v575_v9, 1 }
 0x49d   : > { %v581_v11 = vadd.f32 %v579_v10, %v1084_v25 }
 0x49f   : > { %865 = vtanh.f32 %v581_v11 }
 0x4a5   : > { %v866_v12 = vpop.eup %865 }
 0x4a6   : > { %v601_v13 = vrot.slane %v866_v12, 7 }
 0x4a8   : > { %809 = vmatmul.msk.f32.vlgmr.msra.gmra.mxu0 %vm368_vm1, %v601_v13 }
 0x525   : > { %v669_v15 = vpop.f32.mrf.mxu0 }
 0x526   : > { %v670_v16 = vadd.f32 %v669_v15, %v599_v14 }
 0x528   : > { %867 = vtanh.f32 %v670_v16 }
 0x52e   : > { %v868_v17 = vpop.eup %867 }
 0x52f   : > { %673 = vst [vmem:[%s291_s6] sm:$0x1] %v868_v17 }
 0x530   : > { %896 = shalt.err (!%p893_p5)
}
 0x531   : > { %812 = dma.vmem_to_hbm [thread:$0]  (%p1001_p6), %s686_s7, 16, %s688_s8, %s675_s9  }
 0x532 PF: > { %s699_s13 = sand.u32 1, %s919_s18   ;;  %p815_p7 = pnand %p749_p9, %p1005_p8 }
 0x533   : > { %s700_s17 = scalar_lea.sflag [#allocation4], %s699_s13 }
 0x534   : > { %p816_p10 = pneg %p815_p7 }
 0x536   : > { %914 = dma.done.wait (%p816_p10), %s700_s17, 16  }
 0x537   : > { %916 = vsyncadd (%p816_p10), %s700_s17, 4294967280  ;;  %p15_p11 = scmp.ge.s32.totalorder %s986_s24, 4   ;;  %s1217_s18 = smov %s923_s19 }
 0x538   : > { %s1218_s19 = smov %s927_s20  ;;  %s1219_s20 = smov %s999_s27 }
 0x539   : > { %s1220_s21 = smov %s986_s24  ;;  %17 = sbr.rel (!%p15_p11) target bundleno = 3 (0x3), region = 128 }
 0x53e   :  { %705 = vsyncpa [#allocation4], 1 }
 0x53f   :  { %707 = vsyncpa [#allocation4 + $0x1], 1 }

</bundles_post_ra>
